<compile_context>
chip_gen: v6e
topology: v6e:2x2x1
jax: 0.10.0
libtpu: 0.0.40
codegen_flags: <defaults>
</compile_context>

<pallas_src>
import functools

import jax
import jax.numpy as jnp
from jax import lax
from jax.experimental import pallas as pl
from jax.experimental.pallas import tpu as pltpu


# ----------------------------------------------------------------------------
# Stage 1: LayerNorm + qkv projection, emitting head-major q/k/v directly.
# ----------------------------------------------------------------------------
def _ln_qkv_kernel(x_ref, gamma_ref, beta_ref, wqkv_ref, qkv_ref, *,
                   eps, heads, dim_head):
    x = x_ref[0].astype(jnp.float32)                         # (tn, D)

    # nn.LayerNorm: biased variance, eps inside rsqrt — all in f32.
    mean = jnp.mean(x, axis=-1, keepdims=True)
    var = jnp.mean((x - mean) ** 2, axis=-1, keepdims=True)
    xn = (x - mean) * lax.rsqrt(var + eps)
    xn = xn * gamma_ref[...] + beta_ref[...]                 # (tn, D) f32

    # qkv projection: bf16 operands (fast mode), f32 MXU accumulation.
    qkv = jnp.dot(xn.astype(wqkv_ref.dtype), wqkv_ref[...],
                  preferred_element_type=jnp.float32)        # (tn, 3*inner)
    qkv = qkv.astype(qkv_ref.dtype)

    # (tn, 3*heads*dh) -> (3*heads, tn, dh) via static lane slices + stores.
    # This rearrangement rides the XLU / ld-st slack behind the MXU-bound
    # projection and replaces the old XLA split+reshape+transpose (which was
    # a full extra HBM round trip between the two pallas_calls).
    for j in range(3 * heads):
        qkv_ref[0, j] = qkv[:, j * dim_head:(j + 1) * dim_head]


# ----------------------------------------------------------------------------
# Stage 2: flash attention over head groups + folded output projection.
# Grid: (B, num_q_tiles, num_head_groups, num_kv_tiles); head-group and kv are
# reduction ("arbitrary") axes; the (tq, D) output block stays resident.
# ----------------------------------------------------------------------------
def _flash_attn_out_kernel(q_ref, k_ref, v_ref, wout_ref, o_ref,
                           m_sc, l_sc, acc_sc, oacc_sc, *,
                           scale, heads_per_step, dim_head, kv_len,
                           needs_mask, approx_recip, exp_dtype):
    hg, ki = pl.program_id(2), pl.program_id(3)
    nhg, nk = pl.num_programs(2), pl.num_programs(3)
    hb = heads_per_step

    @pl.when((hg == 0) & (ki == 0))
    def _init_output_acc():
        oacc_sc[...] = jnp.zeros_like(oacc_sc)

    @pl.when(ki == 0)
    def _init_group_state():
        m_sc[...] = jnp.full_like(m_sc, -jnp.inf)
        l_sc[...] = jnp.zeros_like(l_sc)
        acc_sc[...] = jnp.zeros_like(acc_sc)

    # Softmax scale folded into q: one (hb, tq, dh) multiply instead of a
    # (hb, tq, tk) multiply on the logits every kv step.
    q = q_ref[0] * scale                                     # (hb, tq, dh)
    k = k_ref[0]                                             # (hb, tk, dh)
    v = v_ref[0]                                             # (hb, tk, dh)

    # q @ k^T for hb heads at once — contracts dh, no materialized transpose.
    s = jnp.einsum('hqd,hkd->hqk', q, k,
                   preferred_element_type=jnp.float32)       # (hb, tq, tk)

    if needs_mask:
        # Sequence was padded up to a tile multiple: mask out padded keys.
        col = ki * k.shape[1] + lax.broadcasted_iota(jnp.int32, s.shape, 2)
        s = jnp.where(col < kv_len, s, -1e30)

    # Online softmax update (state in f32).
    m_prev = m_sc[...]
    m_new = jnp.maximum(m_prev, jnp.max(s, axis=-1, keepdims=True))
    alpha = jnp.exp(m_prev - m_new)
    # exp of the shifted logits in the compute dtype (bf16 on the fast path):
    # halves EUP pressure on bf16-EUP parts and removes the MXU-operand cast.
    p = jnp.exp((s - m_new).astype(exp_dtype))               # (hb, tq, tk)
    l_sc[...] = alpha * l_sc[...] + jnp.sum(
        p.astype(jnp.float32), axis=-1, keepdims=True)
    acc_sc[...] = alpha * acc_sc[...] + jnp.einsum(
        'hqk,hkd->hqd', p.astype(v.dtype), v,
        preferred_element_type=jnp.float32)                  # (hb, tq, dh)
    m_sc[...] = m_new

    # End of the kv reduction for this head group: normalize, widen the
    # contraction to hb*dh (better MXU depth than per-head K=dh) and fold
    # straight into the resident (tq, D) output accumulator.  W_out is fully
    # resident in VMEM; its rows for this head group are sliced here.
    @pl.when(ki == nk - 1)
    def _fold_group_into_output():
        inv_l = pl.reciprocal(l_sc[...], approx=approx_recip)
        head_out = acc_sc[...] * inv_l                       # (hb, tq, dh) f32
        if hb > 1:
            wide = jnp.concatenate([head_out[j] for j in range(hb)], axis=-1)
        else:
            wide = head_out[0]                               # (tq, hb*dh)
        row0 = pl.multiple_of(hg * (hb * dim_head), hb * dim_head)
        w = wout_ref[pl.ds(row0, hb * dim_head), :]          # (hb*dh, D)
        oacc_sc[...] += jnp.dot(wide.astype(wout_ref.dtype), w,
                                preferred_element_type=jnp.float32)

    @pl.when((ki == nk - 1) & (hg == nhg - 1))
    def _store():
        o_ref[0] = oacc_sc[...].astype(o_ref.dtype)


# ----------------------------------------------------------------------------
# Wrapper helpers.
# ----------------------------------------------------------------------------
def _pick_tile(n, preferred):
    for t in preferred:
        if t <= n and n % t == 0:
            return t
    return n


def _pick_head_block(heads, dim_head, requested):
    if requested is not None:
        assert heads % requested == 0
        return requested
    # Widen the W_out fold contraction towards ~128 (full v6e MXU depth);
    # v7x callers may request 256 // dim_head explicitly via head_block=.
    target = max(1, 128 // dim_head)
    for c in range(min(target, heads), 0, -1):
        if heads % c == 0:
            return c
    return 1


def _vmem_limit_bytes():
    # Size the scoped-VMEM budget per TPU generation (64 MiB on v7x,
    # 128 MiB on v5e/v6e); fall back to a conservative 48 MiB.
    try:
        cap = pltpu.get_tpu_info().vmem_capacity_bytes
        return int(min(cap * 3 // 4, 100 * 1024 * 1024))
    except Exception:
        return 48 * 1024 * 1024


def attention_pallas(x, gamma, beta, w_qkv, w_out, *, heads, dim_head,
                     fast=True, head_block=None, out_dtype=None):
    """x: (B, N, D); gamma/beta: (D,); w_qkv: (D, 3*heads*dim_head);
    w_out: (heads*dim_head, D).  Returns (B, N, D).

    fast=True  : bf16 MXU operands, bf16 exp, approx EUP reciprocal.
    fast=False : f32 everywhere, exact reciprocal (testing path).
    """
    B, N, D = x.shape
    inner = heads * dim_head
    assert w_qkv.shape == (D, 3 * inner) and w_out.shape == (inner, D)
    assert dim_head % 8 == 0, "dim_head must be a multiple of 8 (sublane)"
    scale = dim_head ** (-0.5)
    compute_dtype = jnp.bfloat16 if fast else jnp.float32
    out_dtype = x.dtype if out_dtype is None else out_dtype

    w_qkv_c = w_qkv.astype(compute_dtype)
    w_out_c = w_out.astype(compute_dtype)
    gamma2 = gamma.reshape(1, D).astype(jnp.float32)
    beta2 = beta.reshape(1, D).astype(jnp.float32)

    # Pad awkward (>=128, non-multiple-of-128) sequence lengths; padded keys
    # are masked in stage 2 and padded query rows are sliced off at the end.
    if N >= 128 and N % 128 != 0:
        n_pad = ((N + 127) // 128) * 128
    else:
        n_pad = N
    needs_mask = n_pad != N
    x_p = jnp.pad(x, ((0, 0), (0, n_pad - N), (0, 0))) if needs_mask else x

    cparams_kwargs = dict(vmem_limit_bytes=_vmem_limit_bytes())

    # ---- Stage 1: LN + qkv projection -> (B, 3*heads, N, dh) head layout ---
    tn = _pick_tile(n_pad, (256, 128))
    qkv_heads = pl.pallas_call(
        functools.partial(_ln_qkv_kernel, eps=1e-5, heads=heads,
                          dim_head=dim_head),
        out_shape=jax.ShapeDtypeStruct((B, 3 * heads, n_pad, dim_head),
                                       compute_dtype),
        grid_spec=pltpu.PrefetchScalarGridSpec(
            num_scalar_prefetch=0,
            grid=(B, n_pad // tn),
            in_specs=[
                pl.BlockSpec((1, tn, D), lambda b, n: (b, n, 0)),       # x
                pl.BlockSpec((1, D), lambda b, n: (0, 0)),              # gamma
                pl.BlockSpec((1, D), lambda b, n: (0, 0)),              # beta
                # TODO(synk): for very large D/inner on v7x, single-buffer
                # this constant-index W_qkv block (pl.Buffered(1)) or tile
                # its column axis to halve its VMEM footprint.
                pl.BlockSpec((D, 3 * inner), lambda b, n: (0, 0)),      # W_qkv
            ],
            out_specs=pl.BlockSpec((1, 3 * heads, tn, dim_head),
                                   lambda b, n: (b, 0, n, 0)),
        ),
        compiler_params=pltpu.CompilerParams(
            dimension_semantics=("parallel", "parallel"), **cparams_kwargs),
    )(x_p, gamma2, beta2, w_qkv_c)

    # ---- Stage 2: flash attention + folded output projection ---------------
    hb = _pick_head_block(heads, dim_head, head_block)
    tq = _pick_tile(n_pad, (512, 256, 128))
    tk = _pick_tile(n_pad, (512, 256, 128))
    grid = (B, n_pad // tq, heads // hb, n_pad // tk)

    out = pl.pallas_call(
        functools.partial(_flash_attn_out_kernel, scale=scale,
                          heads_per_step=hb, dim_head=dim_head, kv_len=N,
                          needs_mask=needs_mask, approx_recip=fast,
                          exp_dtype=compute_dtype),
        out_shape=jax.ShapeDtypeStruct((B, n_pad, D), out_dtype),
        grid_spec=pltpu.PrefetchScalarGridSpec(
            num_scalar_prefetch=0,
            grid=grid,
            in_specs=[
                pl.BlockSpec((1, hb, tq, dim_head),
                             lambda b, qi, hg, ki: (b, hg, qi, 0)),       # q
                pl.BlockSpec((1, hb, tk, dim_head),
                             lambda b, qi, hg, ki:
                             (b, heads // hb + hg, ki, 0)),               # k
                pl.BlockSpec((1, hb, tk, dim_head),
                             lambda b, qi, hg, ki:
                             (b, 2 * (heads // hb) + hg, ki, 0)),         # v
                # W_out held fully resident (constant index -> one DMA).
                pl.BlockSpec((inner, D), lambda b, qi, hg, ki: (0, 0)),   # W_out
            ],
            out_specs=pl.BlockSpec((1, tq, D),
                                   lambda b, qi, hg, ki: (b, qi, 0)),
            scratch_shapes=[
                pltpu.VMEM((hb, tq, 1), jnp.float32),          # running max
                pltpu.VMEM((hb, tq, 1), jnp.float32),          # running denom
                pltpu.VMEM((hb, tq, dim_head), jnp.float32),   # p@v acc
                pltpu.VMEM((tq, D), jnp.float32),              # output acc
            ],
        ),
        compiler_params=pltpu.CompilerParams(
            dimension_semantics=("parallel", "parallel",
                                 "arbitrary", "arbitrary"),
            **cparams_kwargs),
    )(qkv_heads, qkv_heads, qkv_heads, w_out_c)

    return out[:, :N, :] if needs_mask else out


def attention_reference(x, gamma, beta, w_qkv, w_out, *, heads, dim_head):
    """Plain-JAX reference mirroring the PyTorch forward."""
    B, N, D = x.shape
    inner = heads * dim_head
    mean = jnp.mean(x, axis=-1, keepdims=True)
    var = jnp.mean((x - mean) ** 2, axis=-1, keepdims=True)
    xn = (x - mean) / jnp.sqrt(var + 1e-5) * gamma + beta
    qkv = xn @ w_qkv                                            # (B, N, 3*inner)
    q, k, v = jnp.split(qkv, 3, axis=-1)

    def to_heads(t):  # b n (h d) -> b h n d
        return t.reshape(B, N, heads, dim_head).transpose(0, 2, 1, 3)

    q, k, v = map(to_heads, (q, k, v))
    dots = jnp.einsum('bhnd,bhmd->bhnm', q, k) * (dim_head ** -0.5)
    attn = jax.nn.softmax(dots, axis=-1)
    out = jnp.einsum('bhnm,bhmd->bhnd', attn, v)
    out = out.transpose(0, 2, 1, 3).reshape(B, N, inner)        # b h n d -> b n (h d)
    return out @ w_out


if __name__ == "__main__":
    # Small, module-consistent shapes.
    B, N, D = 2, 8, 32
    heads, dim_head = 4, 16
    inner = heads * dim_head

    key = jax.random.PRNGKey(0)
    kx, kq, ko, kg, kb = jax.random.split(key, 5)

    x = jax.random.normal(kx, (B, N, D), dtype=jnp.float32)

    # Linear weights stored pre-transposed: PyTorch Linear keeps (out, in);
    # we keep (in, out) so the kernel does x @ W.
    w_qkv = jax.random.normal(kq, (D, 3 * inner), dtype=jnp.float32) * 0.05
    w_out = jax.random.normal(ko, (inner, D), dtype=jnp.float32) * 0.05
    gamma = jnp.ones((D,), dtype=jnp.float32) + 0.1 * jax.random.normal(kg, (D,))
    beta = 0.1 * jax.random.normal(kb, (D,), dtype=jnp.float32)

    y_ref = attention_reference(x, gamma, beta, w_qkv, w_out,
                                heads=heads, dim_head=dim_head)

    # Exact path (f32 matmuls, exact reciprocal): tight tolerance.
    y_f32 = attention_pallas(x, gamma, beta, w_qkv, w_out,
                             heads=heads, dim_head=dim_head, fast=False)
    y_f32 = jax.block_until_ready(y_f32)
    assert y_f32.shape == (B, N, D)
    assert jnp.allclose(y_f32, y_ref, atol=1e-4, rtol=1e-4), \
        "f32 path mismatch vs JAX reference"

    # Fast path (bf16 MXU operands, bf16 exp, approx reciprocal): loose tol.
    y_fast = attention_pallas(x, gamma, beta, w_qkv, w_out,
                              heads=heads, dim_head=dim_head, fast=True)
    y_fast = jax.block_until_ready(y_fast)
    assert y_fast.shape == (B, N, D)
    assert jnp.allclose(y_fast, y_ref, atol=2e-2, rtol=2e-2), \
        "bf16 fast path mismatch vs JAX reference"

    print("KERNEL_OK")
</pallas_src>

<mosaic_0001>
module attributes {stable_mosaic.version = 11 : i64} {
  func.func @_ln_qkv_kernel(%arg0: i32, %arg1: i32, %arg2: memref<1x8x32xf32, #tpu.memory_space<vmem>>, %arg3: memref<1x32xf32, #tpu.memory_space<vmem>>, %arg4: memref<1x32xf32, #tpu.memory_space<vmem>>, %arg5: memref<32x192xf32, #tpu.memory_space<vmem>>, %arg6: memref<1x12x8x16xf32, #tpu.memory_space<vmem>>) attributes {dimension_semantics = [#tpu.dimension_semantics<parallel>, #tpu.dimension_semantics<parallel>], iteration_bounds = array<i64: 2, 1>, scalar_prefetch = 0 : i64, scratch_operands = 0 : i64, tpu.core_type = #tpu.core_type<tc>, window_params = [{transform_indices = @transform_0, window_bounds = array<i64: 1, 8, 32>}, {pipeline_mode = #tpu.pipeline_mode<synchronous>, transform_indices = @transform_1, window_bounds = array<i64: 1, 32>}, {pipeline_mode = #tpu.pipeline_mode<synchronous>, transform_indices = @transform_2, window_bounds = array<i64: 1, 32>}, {pipeline_mode = #tpu.pipeline_mode<synchronous>, transform_indices = @transform_3, window_bounds = array<i64: 32, 192>}, {transform_indices = @transform_4, window_bounds = array<i64: 1, 12, 8, 16>}]} {
    %c0 = arith.constant 0 : index
    %c0_0 = arith.constant 0 : index
    %c0_1 = arith.constant 0 : index
    %0 = vector.load %arg2[%c0, %c0_0, %c0_1] : memref<1x8x32xf32, #tpu.memory_space<vmem>>, vector<1x8x32xf32>
    %1 = vector.shape_cast %0 : vector<1x8x32xf32> to vector<8x32xf32>
    %cst = arith.constant dense<0.000000e+00> : vector<8xf32>
    %2 = vector.multi_reduction <add>, %1, %cst [1] : vector<8x32xf32> to vector<8xf32>
    %3 = vector.shape_cast %2 : vector<8xf32> to vector<8x1xf32>
    %cst_2 = arith.constant 3.200000e+01 : f32
    %4 = vector.broadcast %cst_2 : f32 to vector<8x1xf32>
    %5 = arith.divf %3, %4 : vector<8x1xf32>
    %6 = vector.broadcast %5 : vector<8x1xf32> to vector<8x32xf32>
    %7 = arith.subf %1, %6 : vector<8x32xf32>
    %8 = arith.mulf %7, %7 : vector<8x32xf32>
    %cst_3 = arith.constant dense<0.000000e+00> : vector<8xf32>
    %9 = vector.multi_reduction <add>, %8, %cst_3 [1] : vector<8x32xf32> to vector<8xf32>
    %10 = vector.shape_cast %9 : vector<8xf32> to vector<8x1xf32>
    %cst_4 = arith.constant 3.200000e+01 : f32
    %11 = vector.broadcast %cst_4 : f32 to vector<8x1xf32>
    %12 = arith.divf %10, %11 : vector<8x1xf32>
    %13 = vector.broadcast %5 : vector<8x1xf32> to vector<8x32xf32>
    %14 = arith.subf %1, %13 : vector<8x32xf32>
    %cst_5 = arith.constant 9.99999974E-6 : f32
    %15 = vector.broadcast %cst_5 : f32 to vector<8x1xf32>
    %16 = arith.addf %12, %15 : vector<8x1xf32>
    %17 = math.rsqrt %16 : vector<8x1xf32>
    %18 = vector.broadcast %17 : vector<8x1xf32> to vector<8x32xf32>
    %19 = arith.mulf %14, %18 : vector<8x32xf32>
    %c0_6 = arith.constant 0 : index
    %c0_7 = arith.constant 0 : index
    %20 = vector.load %arg3[%c0_6, %c0_7] : memref<1x32xf32, #tpu.memory_space<vmem>>, vector<1x32xf32>
    %21 = vector.broadcast %20 : vector<1x32xf32> to vector<8x32xf32>
    %22 = arith.mulf %19, %21 : vector<8x32xf32>
    %c0_8 = arith.constant 0 : index
    %c0_9 = arith.constant 0 : index
    %23 = vector.load %arg4[%c0_8, %c0_9] : memref<1x32xf32, #tpu.memory_space<vmem>>, vector<1x32xf32>
    %24 = vector.broadcast %23 : vector<1x32xf32> to vector<8x32xf32>
    %25 = arith.addf %22, %24 : vector<8x32xf32>
    %c0_10 = arith.constant 0 : index
    %c0_11 = arith.constant 0 : index
    %26 = vector.load %arg5[%c0_10, %c0_11] : memref<32x192xf32, #tpu.memory_space<vmem>>, vector<32x192xf32>
    %cst_12 = arith.constant dense<0.000000e+00> : vector<8x192xf32>
    %27 = tpu.matmul %25, %26, %cst_12 {dimension_numbers = #tpu.dot_dimension_numbers<[1], [0], [0], [1], [0, 0, 1, 1], [], []>} : vector<8x32xf32>, vector<32x192xf32>, vector<8x192xf32> -> vector<8x192xf32>
    %28 = vector.extract_strided_slice %27 {offsets = [0, 0], sizes = [8, 16], strides = [1, 1]} : vector<8x192xf32> to vector<8x16xf32>
    %c0_13 = arith.constant 0 : index
    %c0_14 = arith.constant 0 : index
    %c0_15 = arith.constant 0 : index
    %c0_16 = arith.constant 0 : index
    %29 = vector.load %arg6[%c0_13, %c0_14, %c0_15, %c0_16] : memref<1x12x8x16xf32, #tpu.memory_space<vmem>>, vector<1x1x8x16xf32>
    %30 = vector.shape_cast %29 : vector<1x1x8x16xf32> to vector<8x16xf32>
    %31 = vector.shape_cast %28 : vector<8x16xf32> to vector<1x1x8x16xf32>
    tpu.vector_store %arg6[%c0_13, %c0_14, %c0_15, %c0_16], %31 {strides = array<i32>} : memref<1x12x8x16xf32, #tpu.memory_space<vmem>>, vector<1x1x8x16xf32>,
    %32 = vector.extract_strided_slice %27 {offsets = [0, 16], sizes = [8, 16], strides = [1, 1]} : vector<8x192xf32> to vector<8x16xf32>
    %c0_17 = arith.constant 0 : index
    %c1 = arith.constant 1 : index
    %c0_18 = arith.constant 0 : index
    %c0_19 = arith.constant 0 : index
    %33 = vector.load %arg6[%c0_17, %c1, %c0_18, %c0_19] : memref<1x12x8x16xf32, #tpu.memory_space<vmem>>, vector<1x1x8x16xf32>
    %34 = vector.shape_cast %33 : vector<1x1x8x16xf32> to vector<8x16xf32>
    %35 = vector.shape_cast %32 : vector<8x16xf32> to vector<1x1x8x16xf32>
    tpu.vector_store %arg6[%c0_17, %c1, %c0_18, %c0_19], %35 {strides = array<i32>} : memref<1x12x8x16xf32, #tpu.memory_space<vmem>>, vector<1x1x8x16xf32>,
    %36 = vector.extract_strided_slice %27 {offsets = [0, 32], sizes = [8, 16], strides = [1, 1]} : vector<8x192xf32> to vector<8x16xf32>
    %c0_20 = arith.constant 0 : index
    %c2 = arith.constant 2 : index
    %c0_21 = arith.constant 0 : index
    %c0_22 = arith.constant 0 : index
    %37 = vector.load %arg6[%c0_20, %c2, %c0_21, %c0_22] : memref<1x12x8x16xf32, #tpu.memory_space<vmem>>, vector<1x1x8x16xf32>
    %38 = vector.shape_cast %37 : vector<1x1x8x16xf32> to vector<8x16xf32>
    %39 = vector.shape_cast %36 : vector<8x16xf32> to vector<1x1x8x16xf32>
    tpu.vector_store %arg6[%c0_20, %c2, %c0_21, %c0_22], %39 {strides = array<i32>} : memref<1x12x8x16xf32, #tpu.memory_space<vmem>>, vector<1x1x8x16xf32>,
    %40 = vector.extract_strided_slice %27 {offsets = [0, 48], sizes = [8, 16], strides = [1, 1]} : vector<8x192xf32> to vector<8x16xf32>
    %c0_23 = arith.constant 0 : index
    %c3 = arith.constant 3 : index
    %c0_24 = arith.constant 0 : index
    %c0_25 = arith.constant 0 : index
    %41 = vector.load %arg6[%c0_23, %c3, %c0_24, %c0_25] : memref<1x12x8x16xf32, #tpu.memory_space<vmem>>, vector<1x1x8x16xf32>
    %42 = vector.shape_cast %41 : vector<1x1x8x16xf32> to vector<8x16xf32>
    %43 = vector.shape_cast %40 : vector<8x16xf32> to vector<1x1x8x16xf32>
    tpu.vector_store %arg6[%c0_23, %c3, %c0_24, %c0_25], %43 {strides = array<i32>} : memref<1x12x8x16xf32, #tpu.memory_space<vmem>>, vector<1x1x8x16xf32>,
    %44 = vector.extract_strided_slice %27 {offsets = [0, 64], sizes = [8, 16], strides = [1, 1]} : vector<8x192xf32> to vector<8x16xf32>
    %c0_26 = arith.constant 0 : index
    %c4 = arith.constant 4 : index
    %c0_27 = arith.constant 0 : index
    %c0_28 = arith.constant 0 : index
    %45 = vector.load %arg6[%c0_26, %c4, %c0_27, %c0_28] : memref<1x12x8x16xf32, #tpu.memory_space<vmem>>, vector<1x1x8x16xf32>
    %46 = vector.shape_cast %45 : vector<1x1x8x16xf32> to vector<8x16xf32>
    %47 = vector.shape_cast %44 : vector<8x16xf32> to vector<1x1x8x16xf32>
    tpu.vector_store %arg6[%c0_26, %c4, %c0_27, %c0_28], %47 {strides = array<i32>} : memref<1x12x8x16xf32, #tpu.memory_space<vmem>>, vector<1x1x8x16xf32>,
    %48 = vector.extract_strided_slice %27 {offsets = [0, 80], sizes = [8, 16], strides = [1, 1]} : vector<8x192xf32> to vector<8x16xf32>
    %c0_29 = arith.constant 0 : index
    %c5 = arith.constant 5 : index
    %c0_30 = arith.constant 0 : index
    %c0_31 = arith.constant 0 : index
    %49 = vector.load %arg6[%c0_29, %c5, %c0_30, %c0_31] : memref<1x12x8x16xf32, #tpu.memory_space<vmem>>, vector<1x1x8x16xf32>
    %50 = vector.shape_cast %49 : vector<1x1x8x16xf32> to vector<8x16xf32>
    %51 = vector.shape_cast %48 : vector<8x16xf32> to vector<1x1x8x16xf32>
    tpu.vector_store %arg6[%c0_29, %c5, %c0_30, %c0_31], %51 {strides = array<i32>} : memref<1x12x8x16xf32, #tpu.memory_space<vmem>>, vector<1x1x8x16xf32>,
    %52 = vector.extract_strided_slice %27 {offsets = [0, 96], sizes = [8, 16], strides = [1, 1]} : vector<8x192xf32> to vector<8x16xf32>
    %c0_32 = arith.constant 0 : index
    %c6 = arith.constant 6 : index
    %c0_33 = arith.constant 0 : index
    %c0_34 = arith.constant 0 : index
    %53 = vector.load %arg6[%c0_32, %c6, %c0_33, %c0_34] : memref<1x12x8x16xf32, #tpu.memory_space<vmem>>, vector<1x1x8x16xf32>
    %54 = vector.shape_cast %53 : vector<1x1x8x16xf32> to vector<8x16xf32>
    %55 = vector.shape_cast %52 : vector<8x16xf32> to vector<1x1x8x16xf32>
    tpu.vector_store %arg6[%c0_32, %c6, %c0_33, %c0_34], %55 {strides = array<i32>} : memref<1x12x8x16xf32, #tpu.memory_space<vmem>>, vector<1x1x8x16xf32>,
    %56 = vector.extract_strided_slice %27 {offsets = [0, 112], sizes = [8, 16], strides = [1, 1]} : vector<8x192xf32> to vector<8x16xf32>
    %c0_35 = arith.constant 0 : index
    %c7 = arith.constant 7 : index
    %c0_36 = arith.constant 0 : index
    %c0_37 = arith.constant 0 : index
    %57 = vector.load %arg6[%c0_35, %c7, %c0_36, %c0_37] : memref<1x12x8x16xf32, #tpu.memory_space<vmem>>, vector<1x1x8x16xf32>
    %58 = vector.shape_cast %57 : vector<1x1x8x16xf32> to vector<8x16xf32>
    %59 = vector.shape_cast %56 : vector<8x16xf32> to vector<1x1x8x16xf32>
    tpu.vector_store %arg6[%c0_35, %c7, %c0_36, %c0_37], %59 {strides = array<i32>} : memref<1x12x8x16xf32, #tpu.memory_space<vmem>>, vector<1x1x8x16xf32>,
    %60 = vector.extract_strided_slice %27 {offsets = [0, 128], sizes = [8, 16], strides = [1, 1]} : vector<8x192xf32> to vector<8x16xf32>
    %c0_38 = arith.constant 0 : index
    %c8 = arith.constant 8 : index
    %c0_39 = arith.constant 0 : index
    %c0_40 = arith.constant 0 : index
    %61 = vector.load %arg6[%c0_38, %c8, %c0_39, %c0_40] : memref<1x12x8x16xf32, #tpu.memory_space<vmem>>, vector<1x1x8x16xf32>
    %62 = vector.shape_cast %61 : vector<1x1x8x16xf32> to vector<8x16xf32>
    %63 = vector.shape_cast %60 : vector<8x16xf32> to vector<1x1x8x16xf32>
    tpu.vector_store %arg6[%c0_38, %c8, %c0_39, %c0_40], %63 {strides = array<i32>} : memref<1x12x8x16xf32, #tpu.memory_space<vmem>>, vector<1x1x8x16xf32>,
    %64 = vector.extract_strided_slice %27 {offsets = [0, 144], sizes = [8, 16], strides = [1, 1]} : vector<8x192xf32> to vector<8x16xf32>
    %c0_41 = arith.constant 0 : index
    %c9 = arith.constant 9 : index
    %c0_42 = arith.constant 0 : index
    %c0_43 = arith.constant 0 : index
    %65 = vector.load %arg6[%c0_41, %c9, %c0_42, %c0_43] : memref<1x12x8x16xf32, #tpu.memory_space<vmem>>, vector<1x1x8x16xf32>
    %66 = vector.shape_cast %65 : vector<1x1x8x16xf32> to vector<8x16xf32>
    %67 = vector.shape_cast %64 : vector<8x16xf32> to vector<1x1x8x16xf32>
    tpu.vector_store %arg6[%c0_41, %c9, %c0_42, %c0_43], %67 {strides = array<i32>} : memref<1x12x8x16xf32, #tpu.memory_space<vmem>>, vector<1x1x8x16xf32>,
    %68 = vector.extract_strided_slice %27 {offsets = [0, 160], sizes = [8, 16], strides = [1, 1]} : vector<8x192xf32> to vector<8x16xf32>
    %c0_44 = arith.constant 0 : index
    %c10 = arith.constant 10 : index
    %c0_45 = arith.constant 0 : index
    %c0_46 = arith.constant 0 : index
    %69 = vector.load %arg6[%c0_44, %c10, %c0_45, %c0_46] : memref<1x12x8x16xf32, #tpu.memory_space<vmem>>, vector<1x1x8x16xf32>
    %70 = vector.shape_cast %69 : vector<1x1x8x16xf32> to vector<8x16xf32>
    %71 = vector.shape_cast %68 : vector<8x16xf32> to vector<1x1x8x16xf32>
    tpu.vector_store %arg6[%c0_44, %c10, %c0_45, %c0_46], %71 {strides = array<i32>} : memref<1x12x8x16xf32, #tpu.memory_space<vmem>>, vector<1x1x8x16xf32>,
    %72 = vector.extract_strided_slice %27 {offsets = [0, 176], sizes = [8, 16], strides = [1, 1]} : vector<8x192xf32> to vector<8x16xf32>
    %c0_47 = arith.constant 0 : index
    %c11 = arith.constant 11 : index
    %c0_48 = arith.constant 0 : index
    %c0_49 = arith.constant 0 : index
    %73 = vector.load %arg6[%c0_47, %c11, %c0_48, %c0_49] : memref<1x12x8x16xf32, #tpu.memory_space<vmem>>, vector<1x1x8x16xf32>
    %74 = vector.shape_cast %73 : vector<1x1x8x16xf32> to vector<8x16xf32>
    %75 = vector.shape_cast %72 : vector<8x16xf32> to vector<1x1x8x16xf32>
    tpu.vector_store %arg6[%c0_47, %c11, %c0_48, %c0_49], %75 {strides = array<i32>} : memref<1x12x8x16xf32, #tpu.memory_space<vmem>>, vector<1x1x8x16xf32>,
    return
  }
  func.func @transform_0(%arg0: i32, %arg1: i32) -> (i32, i32, i32) {
    %c0_i32 = arith.constant 0 : i32
    %c0_i32_0 = arith.constant 0 : i32
    return %arg0, %arg1, %c0_i32 : i32, i32, i32
  }
  func.func @transform_1(%arg0: i32, %arg1: i32) -> (i32, i32) {
    %c0_i32 = arith.constant 0 : i32
    %c0_i32_0 = arith.constant 0 : i32
    %c0_i32_1 = arith.constant 0 : i32
    return %c0_i32, %c0_i32_0 : i32, i32
  }
  func.func @transform_2(%arg0: i32, %arg1: i32) -> (i32, i32) {
    %c0_i32 = arith.constant 0 : i32
    %c0_i32_0 = arith.constant 0 : i32
    %c0_i32_1 = arith.constant 0 : i32
    return %c0_i32, %c0_i32_0 : i32, i32
  }
  func.func @transform_3(%arg0: i32, %arg1: i32) -> (i32, i32) {
    %c0_i32 = arith.constant 0 : i32
    %c0_i32_0 = arith.constant 0 : i32
    %c0_i32_1 = arith.constant 0 : i32
    return %c0_i32, %c0_i32_0 : i32, i32
  }
  func.func @transform_4(%arg0: i32, %arg1: i32) -> (i32, i32, i32, i32) {
    %c0_i32 = arith.constant 0 : i32
    %c0_i32_0 = arith.constant 0 : i32
    %c0_i32_1 = arith.constant 0 : i32
    return %arg0, %c0_i32, %arg1, %c0_i32_0 : i32, i32, i32, i32
  }
}

</mosaic_0001>

<bundles_post_ra>
// kernel: tpu_custom_call.1
= control target key start
LH: loop header
LB: loop body
LE: loop exit
PB: predicated region body
PF: predicated region fallthrough
CT: control target
= control target key end

     0   :  { %s1038_s0 = inlined_call_operand.hbm [shape: f32[2,8,32], index: 0, kind: input, shape index: {}]   ;;  %s1039_s1 = inlined_call_operand.vmem [shape: f32[1,32], index: 1, kind: input, shape index: {}]   ;;  %s1040_s2 = inlined_call_operand.vmem [shape: f32[1,32], index: 2, kind: input, shape index: {}]   ;;  %s1041_s3 = inlined_call_operand.hbm [shape: f32[32,192], index: 3, kind: input, shape index: {}]   ;;  %s1042_s4 = inlined_call_operand.hbm [shape: f32[2,12,8,16], index: 4, kind: output, shape index: {}]  }
   0x1   :  { %1044 = sst [smem:[#allocation11_spill]] %s1041_s3 }
   0x2   :  { %9 = vsyncpa [#allocation3], 0 }
   0x3   :  { %11 = vsyncpa [#allocation3 + $0x1], 0 }
   0x4   :  { %12 = vsyncpa [#allocation6], 0 }
   0x5   :  { %13 = vsyncpa [#allocation4], 0 }
   0x6   :  { %15 = vsyncpa [#allocation4 + $0x1], 0  ;;  %s820_s15 = smov 0   ;;  %s822_s16 = smov 0  }
   0x7   :  { %s824_s17 = smov 0   ;;  %s826_s18 = smov 0  }
   0x8   :  { %s828_s19 = smov 0   ;;  %s830_s20 = smov 0  }
   0x9 LB: > { %s524_s21 = sadd.s32 4294967295, %s778_s20   ;;  %s525_s22 = sadd.s32 4294967294, %s778_s20   ;;  %s778_s20 = sphi %s830_s20, %s21_s20   ;;  %s774_s19 = sphi %s828_s19, %s1062_s19   ;;  %s770_s18 = sphi %s826_s18, %s1061_s18   ;;  %s766_s17 = sphi %s824_s17, %s1060_s17   ;;  %s762_s16 = sphi %s822_s16, %s1059_s16   ;;  %s758_s15 = sphi %s820_s15, %s1058_s15  }
   0xa   : > { %p55_p0 = scmp.ne.s32.totalorder %s762_s16, %s758_s15  ;;  %p854_p1 = scmp.eq.s32.totalorder %s524_s21, 0 }
   0xb   : > { %p858_p2 = scmp.eq.s32.totalorder %s524_s21, 1  ;;  %p150_p3 = scmp.eq.s32.totalorder %s525_s22, 1 }
   0xc   : > { %p864_p4 = por %p854_p1, %p55_p0  ;;  %p526_p5 = scmp.ge.s32.totalorder %s778_s20, 1 }
   0xd   : > { %p869_p6 = por %p150_p3, %p55_p0  ;;  %p157_p7 = scmp.lt.s32.totalorder %s778_s20, 3 }
   0xe   : > { %s1047_s25 = scalar_select %p864_p4, 1, 0 }
   0xf   : > { %s1048_s26 = scalar_select %p869_p6, 1, 0 }
  0x10   : > { %p874_p8 = pnand %p526_p5, %p157_p7  ;;  %s780_s28 = smov [#allocation5]  }
  0x11   : > { %s175_s29 = sshll.u32 %s780_s28, 4  ;;  %s33_s5 = sadd.s32 1, %s774_s19  ;;  %s176_s29 = int_to_ptr.vmem [resolvable:$true] %s175_s29 }
  0x12   : > { %p561_p9 = pneg %p874_p8  ;;  %s651_s6 = scalar_lea.vmem %s176_s29, 1024 }
  0x13   : > { %p652_p13 = scmp.ne.s32.totalorder %s176_s29, %s651_s6  ;;  %p659_p5 = scmp.lt.s32.totalorder %s176_s29, %s176_s29 }
  0x14   : > { %p883_p11 = pnand %p561_p9, %p854_p1  ;;  %p660_p7 = scmp.lt.s32.totalorder %s651_s6, %s651_s6 }
  0x16   : > { %p642_p12 = pneg %p883_p11  ;;  %p661_p6 = por %p660_p7, %p659_p5 }
  0x18   : > { %p654_p0 = pnand %p652_p13, %p642_p12 }
  0x1a   : > { %p655_p3 = pneg %p654_p0 }
  0x1c   : > { %p662_p4 = pnand %p661_p6, %p655_p3 }
  0x1e   : > { %665 = shalt.err (!%p662_p4)
}
  0x1f   : > { %s781_s7 = smov 256   ;;  %s782_s8 = smov 16  }
  0x20   : > { %s1051_s3 = sld [smem:[#allocation11_spill]]  ;;  %p35_p6 = scmp.ge.s32.totalorder %s33_s5, 2 }
  0x21   : > { %s42_s11 = sadd.s32 1, %s766_s17  ;;  %p49_p4 = scmp.ne.s32.totalorder %s766_s17, %s762_s16 }
  0x22   : > { %p50_p9 = scmp.eq.s32.totalorder %s778_s20, 0  ;;  %s1064_s5 = smov (%p35_p6, %s33_s5), 0 }
  0x23   : > { %p907_p13 = por %p858_p2, %p49_p4  ;;  %s37_s14 = ssub.s32 %s774_s19, %s1064_s5 }
  0x24   : > { %p901_p12 = por %p50_p9, %p49_p4  ;;  %p574_p0 = scmp.lt.s32.totalorder %s778_s20, 2 }
  0x25   : > { %s189_s21 = sand.u32 1, %s766_s17  }
  0x26   : > { %564 = dma.hbm_to_vmem [thread:$0]  (!%p883_p11), %s1051_s3, 1024, %s176_s29, [#allocation6], %s781_s7, %s781_s7, %s782_s8  }
  0x27   : > { %p40_p11 = scmp.eq.s32.totalorder %s37_s14, 0  ;;  %s529_s22 = sshll.u32 %s189_s21, 3 }
  0x28   : > { %s530_s29 = sshll.u32 %s774_s19, 7  ;;  %s193_s8 = scalar_lea.vmem [#allocation2], %s529_s22 }
  0x29   : > { %s916_s28 = scalar_select %p40_p11, %s766_s17, %s42_s11  }
  0x2a   : > { %s199_s7 = scalar_lea.hbm %s1038_s0, %s530_s29  ;;  %s201_s9 = sshll.u32 %s193_s8, 4  ;;  %s202_s9 = int_to_ptr.vmem [resolvable:$true] %s201_s9 }
  0x2b   : > { %p924_p2 = pnand %p574_p0, %p901_p12  ;;  %s190_s10 = scalar_lea.sflag [#allocation3], %s189_s21 }
  0x2c   : > { %s679_s14 = scalar_lea.vmem %s202_s9, 128  ;;  %s783_s11 = smov [#allocation2]  }
  0x2d   : > { %p668_p3 = pneg %p924_p2  ;;  %p680_p5 = scmp.ne.s32.totalorder %s202_s9, %s679_s14 }
  0x2e   : > { %s684_s3 = sshll.u32 %s783_s11, 4  ;;  %s685_s3 = int_to_ptr.vmem [resolvable:$false] %s684_s3 }
  0x2f   : > { %p682_p7 = pnand %p680_p5, %p668_p3  ;;  %s686_s29 = scalar_lea.vmem %s685_s3, 256 }
  0x30   : > { %p687_p4 = scmp.lt.s32.totalorder %s202_s9, %s685_s3  ;;  %p688_p9 = scmp.lt.s32.totalorder %s686_s29, %s679_s14 }
  0x31   : > { %p683_p6 = pneg %p682_p7 }
  0x32   : > { %p689_p11 = por %p688_p9, %p687_p4 }
  0x34   : > { %p690_p10 = pnand %p689_p11, %p683_p6 }
  0x36   : > { %693 = shalt.err (!%p690_p10)
}
  0x37   : > { %568 = dma.hbm_to_vmem [thread:$0]  (!%p924_p2), %s199_s7, 128, %s202_s9, %s190_s10  }
  0x38   : > { %210 = sbr.rel (%p874_p8) target bundleno = 723 (0x2d3), region = 36  ;;  %s935_s12 = sand.u32 (!%p874_p8), 1, %s762_s16  }
  0x39   : > { %s532_s21 = sshll.u32 (!%p874_p8), %s935_s12, 3  ;;  %s213_s22 = scalar_lea.sflag (!%p874_p8), [#allocation3], %s935_s12 }
  0x3a   : > { %s216_s30 = scalar_lea.vmem (!%p874_p8), [#allocation2], %s532_s21  ;;  %p1055_p12 = scmp.ne.s32.totalorder (!%p874_p8), %s1047_s25, 0 }
  0x3d   : > { %745 = dma.done.wait (%p1055_p12), %s213_s22, 128  }
  0x3e   : > { %747 = vsyncadd (%p1055_p12), %s213_s22, 4294967168 }
  0x3f   : > { %749 = dma.done.wait (%p854_p1), [#allocation6], 1024  }
  0x40   : > { %751 = vsyncadd (%p854_p1), [#allocation6], 4294966272  ;;  %vm246_vm0 = vcmask 261120   ;;  %v245_v0 = vld [vmem:[%s216_s30] sm:$0xff]  ;;  %v282_v9 = vld [vmem:[#allocation5 + $0x28] sm:$0xff]  ;;  %v784_v11 = vmov 0.0  }
  0x41   : > { %v247_v1 = vsel %vm246_vm0, %v245_v0, 0.0  ;;  %v284_v7 = vld [vmem:[#allocation5 + $0x38] sm:$0xff]  ;;  %v283_v8 = vld [vmem:[#allocation5 + $0x30] sm:$0xff]  ;;  %v281_v10 = vld [vmem:[#allocation5 + $0x20] sm:$0xff]  ;;  %352 = vmatprep.mubr.f32.mxu0 %v784_v11  ;;  %s551_s6 = smul.u32 96, %s935_s12  ;;  %vm359_vm1 = vcmask 130048  }
  0x42   : > { %248 = vadd.xlane.f32.xlu0 %v247_v1  ;;  %312 = vmatprep.subr.mxu0 %v284_v7  ;;  %v280_v12 = vld [vmem:[#allocation5 + $0x18] sm:$0xff]  ;;  %v279_v13 = vld [vmem:[#allocation5 + $0x10] sm:$0xff]  ;;  %v278_v14 = vld [vmem:[#allocation5 + $0x8] sm:$0xff]  ;;  %s785_s8 = smov 80   ;;  %s786_s9 = smov 112  }
  0x43   : > { %313 = vmatpush1.msra.mxu0 %v283_v8  ;;  %v277_v15 = vld [vmem:[#allocation5] sm:$0xff]  ;;  %v534_v20 = vld [vmem:[%s1039_s1] ss:$0 sm:$0xff]  ;;  %s957_s7 = scalar_lea.vmem [#allocation7], %s551_s6  ;;  %s787_s24 = smov 96  }
  0x44   : > { %314 = vmatprep.subr.mxu0 %v282_v9  ;;  %v535_v22 = vld [vmem:[%s1040_s2] ss:$0 sm:$0xff]  ;;  %s788_s10 = smov 64   ;;  %s789_s14 = smov 48  }
  0x45   : > { %315 = vmatpush1.msra.mxu0 %v281_v10  ;;  %s790_s11 = smov 32   ;;  %s791_s29 = smov 16  }
  0x46   : > { %316 = vmatprep.subr.mxu0 %v280_v12  ;;  %s552_s21 = smul.u32 1536, %s770_s18  ;;  %s430_s22 = sshll.u32 %s957_s7, 4  ;;  %s988_s22 = int_to_ptr.vmem [resolvable:$true] %s430_s22 }
  0x47   : > { %317 = vmatpush1.msra.mxu0 %v279_v13  ;;  %s416_s25 = scalar_lea.sflag [#allocation4], %s935_s12  ;;  %s694_s27 = scalar_lea.vmem %s988_s22, 1536 }
  0x48   : > { %318 = vmatprep.subr.mxu0 %v278_v14  ;;  %s986_s23 = scalar_lea.hbm %s1042_s4, %s552_s21  ;;  %p695_p1 = scmp.ne.s32.totalorder %s988_s22, %s694_s27 }
  0x49   : > { %319 = vmatpush1.msra.mxu0 %v277_v15  ;;  %s792_s18 = smov [#allocation7]  }
  0x4a   : > { %p696_p8 = pnand %p695_p1, %p907_p13  ;;  %s698_s6 = sshll.u32 %s792_s18, 4  ;;  %s699_s6 = int_to_ptr.vmem [resolvable:$false] %s698_s6 }
  0x4b   : > { %p701_p0 = scmp.lt.s32.totalorder %s988_s22, %s699_s6 }
  0x4c   : > { %p697_p10 = pneg %p696_p8 }
  0xcb   : > { %v249_v2 = vpop.xlane.xlu0 %248 }
  0xcc   : > { %v251_v3 = vmul.f32 0.03125, %v249_v2 }
  0xce   : > { %v252_v4 = vsub.f32 %v245_v0, %v251_v3 }
  0xd0   : > { %v253_v5 = vmul.f32 %v252_v4, %v252_v4 }
  0xd2   : > { %v254_v6 = vsel %vm246_vm0, %v253_v5, 0.0 }
  0xd3   : > { %255 = vadd.xlane.f32.xlu0 %v254_v6 }
 0x15c   : > { %v256_v16 = vpop.xlane.xlu0 %255 }
 0x15d   : > { %v257_v17 = vmul.f32 0.03125, %v256_v16 }
 0x15f   : > { %v258_v18 = vadd.f32 1e-05, %v257_v17 }
 0x161   : > { %638 = vrsqrt.f32 %v258_v18 }
 0x16e   : > { %v639_v19 = vpop.eup %638 }
 0x16f   : > { %v260_v21 = vmul.f32 %v639_v19, %v252_v4 }
 0x171   : > { %v268_v23 = vmul.f32 %v534_v20, %v260_v21 }
 0x173   : > { %v276_v24 = vadd.f32 %v535_v22, %v268_v23 }
 0x175   : > { %536 = vmatmul.mubr.msk.f32.vlgmr.msra.gmra.mxu0 %vm246_vm0, %v276_v24 }
 0x235   : > { %v354_v25 = vpop.f32.mrf.mxu0 }
 0x236   : > { %360 = vst.msk [vmem:[%s957_s7] sm:$0xff] %vm359_vm1, %v354_v25  ;;  %372 = vrot.lane.b32.xlu0 %v354_v25, %s785_s8  ;;  %362 = vrot.lane.b32.xlu1 %v354_v25, %s786_s9 }
 0x237   : > { %v356_v26 = vpop.f32.mrf.mxu0 }
 0x238   : > { %544 = vst.msk [vmem:[%s957_s7 + $0x40] sm:$0xff] %vm359_vm1, %v356_v26 }
 0x23a   : > { %367 = vrot.lane.b32.xlu1 %v354_v25, %s787_s24  ;;  %410 = vrot.lane.b32.xlu0 %v356_v26, %s785_s8  ;;  %s700_s8 = scalar_lea.vmem %s699_s6, 3072 }
 0x23b   : > { %p702_p2 = scmp.lt.s32.totalorder %s700_s8, %s694_s27 }
 0x23d   : > { %p703_p3 = por %p702_p2, %p701_p0 }
 0x23e   : > { %377 = vrot.lane.b32.xlu1 %v354_v25, %s788_s10 }
 0x23f   : > { %p704_p5 = pnand %p703_p3, %p697_p10 }
 0x242   : > { %382 = vrot.lane.b32.xlu1 %v354_v25, %s789_s14 }
 0x246   : > { %387 = vrot.lane.b32.xlu1 %v354_v25, %s790_s11 }
 0x24a   : > { %392 = vrot.lane.b32.xlu1 %v354_v25, %s791_s29 }
 0x24e   : > { %400 = vrot.lane.b32.xlu1 %v356_v26, %s786_s9 }
 0x252   : > { %405 = vrot.lane.b32.xlu1 %v356_v26, %s787_s24 }
 0x2a8   : > { %v373_v27 = vpop.permute.xlu0 %372  ;;  %v363_v28 = vpop.permute.xlu1 %362 }
 0x2a9   : > { %539 = vst.msk [vmem:[%s957_s7 + $0x18] sm:$0xff] %vm359_vm1, %v373_v27  ;;  %537 = vst.msk [vmem:[%s957_s7 + $0x8] sm:$0xff] %vm359_vm1, %v363_v28 }
 0x2ac   : > { %v368_v29 = vpop.permute.xlu1 %367  ;;  %v411_v30 = vpop.permute.xlu0 %410 }
 0x2ad   : > { %538 = vst.msk [vmem:[%s957_s7 + $0x10] sm:$0xff] %vm359_vm1, %v368_v29  ;;  %547 = vst.msk [vmem:[%s957_s7 + $0x58] sm:$0xff] %vm359_vm1, %v411_v30 }
 0x2b0   : > { %v378_v31 = vpop.permute.xlu1 %377 }
 0x2b1   : > { %540 = vst.msk [vmem:[%s957_s7 + $0x20] sm:$0xff] %vm359_vm1, %v378_v31 }
 0x2b4   : > { %v383_v32 = vpop.permute.xlu1 %382 }
 0x2b5   : > { %541 = vst.msk [vmem:[%s957_s7 + $0x28] sm:$0xff] %vm359_vm1, %v383_v32 }
 0x2b8   : > { %v388_v33 = vpop.permute.xlu1 %387 }
 0x2b9   : > { %542 = vst.msk [vmem:[%s957_s7 + $0x30] sm:$0xff] %vm359_vm1, %v388_v33 }
 0x2bc   : > { %v393_v34 = vpop.permute.xlu1 %392 }
 0x2bd   : > { %543 = vst.msk [vmem:[%s957_s7 + $0x38] sm:$0xff] %vm359_vm1, %v393_v34 }
 0x2c0   : > { %v401_v35 = vpop.permute.xlu1 %400 }
 0x2c1   : > { %545 = vst.msk [vmem:[%s957_s7 + $0x48] sm:$0xff] %vm359_vm1, %v401_v35 }
 0x2c4   : > { %v406_v36 = vpop.permute.xlu1 %405 }
 0x2c5   : > { %546 = vst.msk [vmem:[%s957_s7 + $0x50] sm:$0xff] %vm359_vm1, %v406_v36 }
 0x2c6   : > { %707 = shalt.err (!%p704_p5)
}
 0x2c7   : > { %s708_s7 = scalar_lea.hbm %s986_s23, 1536  ;;  %s712_s10 = scalar_lea.hbm %s1042_s4, 3072 }
 0x2c8   : > { %p709_p7 = scmp.ne.s32.totalorder %s986_s23, %s708_s7  ;;  %p713_p9 = scmp.lt.s32.totalorder %s986_s23, %s1042_s4 }
 0x2c9   : > { %p714_p11 = scmp.lt.s32.totalorder %s712_s10, %s708_s7 }
 0x2ca   : > { %p710_p6 = pnand %p709_p7, %p907_p13 }
 0x2cb   : > { %p715_p12 = por %p714_p11, %p713_p9 }
 0x2cc   : > { %p711_p4 = pneg %p710_p6 }
 0x2ce   : > { %p716_p1 = pnand %p715_p12, %p711_p4 }
 0x2d0   : > { %719 = shalt.err (!%p716_p1)
}
 0x2d1   : > { %s793_s29 = smov 128   ;;  %s794_s21 = smov 8  }
 0x2d2   : > { %559 = dma.vmem_to_hbm [thread:$0]  (%p907_p13), %s988_s22, 1536, %s986_s23, %s416_s25, %s793_s29, %s793_s29, %s794_s21  }
 0x2d3 PF: > { %s445_s30 = sand.u32 1, %s758_s15   ;;  %p1056_p8 = scmp.ne.s32.totalorder %s1048_s26, 0 }
 0x2d4   : > { %p1057_p10 = scmp.ge.s32.totalorder %s778_s20, 2  ;;  %s446_s3 = scalar_lea.sflag [#allocation4], %s445_s30 }
 0x2d6   : > { %p570_p0 = pnand %p1057_p10, %p1056_p8 }
 0x2d8   : > { %p571_p2 = pneg %p570_p0 }
 0x2da   : > { %753 = dma.done.wait (%p571_p2), %s446_s3, 1536  }
 0x2db   : > { %755 = vsyncadd (%p571_p2), %s446_s3, 4294965760  ;;  %s21_s20 = sadd.s32 1, %s778_s20   ;;  %s1058_s15 = smov %s762_s16 }
 0x2dc   : > { %p18_p3 = scmp.ge.s32.totalorder %s21_s20, 4   ;;  %s1059_s16 = smov %s766_s17 }
 0x2dd   : > { %s1060_s17 = smov %s916_s28  ;;  %s1061_s18 = smov %s774_s19 }
 0x2de   : > { %s1062_s19 = smov %s1064_s5  ;;  %20 = sbr.rel (!%p18_p3) target bundleno = 9 (0x9), region = 96 }
 0x2e3   :  { %451 = vsyncpa [#allocation3], 1 }
 0x2e4   :  { %453 = vsyncpa [#allocation3 + $0x1], 1 }
 0x2e5   :  { %454 = vsyncpa [#allocation6], 1 }
 0x2e6   :  { %455 = vsyncpa [#allocation4], 1 }
 0x2e7   :  { %457 = vsyncpa [#allocation4 + $0x1], 1 }

</bundles_post_ra>
